<compile_context>
chip_gen: v7x
topology: tpu7x:2x2x1
jax: 0.10.0
libtpu: 0.0.40
codegen_flags: <defaults>
</compile_context>

<pallas_src>
import jax
import jax.numpy as jnp
from jax.experimental import pallas as pl
from jax.experimental.pallas import tpu as pltpu


# ----------------------------- Pallas kernel ------------------------------ #

def _shift_matrix(t, dtype):
    """(t, t) matrix S with S[j, m] = 1 iff j == m - 1, so (x @ S)[:, m] = x[:, m-1]
    and column 0 is all zeros (== the conv zero-padding at the left edge)."""
    rows = jax.lax.broadcasted_iota(jnp.int32, (t, t), 0)
    cols = jax.lax.broadcasted_iota(jnp.int32, (t, t), 1)
    return (rows + 1 == cols).astype(dtype)


def _make_fused_kernel(c1, c2, emb1, emb2, t4):
    """Fused two-stage (stride-2 each) gated-conv UNet encoder.

    Per grid step (one batch element), channel-major / time-on-lanes:
      xp_ref : (1, 4, C0, T4)   input phases  xp[p][:, m] = x[:, 4m + p]
      w1_ref : (3, 2*C1, C0)    stage-1 taps, tanh|gate fused on the output dim
      b1_ref : (2*C1, 1)
      w2_ref : (3, 2*C2, C1-emb1)  stage-2 taps
      b2_ref : (2*C2, 1)
      e1_ref : (1, 2, emb1, T4)  stage-1 embedding, even/odd output phases
      e2_ref : (1, emb2, T4)     stage-2 embedding (T2 == T4)
    """
    def kernel(xp_ref, w1_ref, b1_ref, w2_ref, b2_ref, e1_ref, e2_ref):
        f32 = jnp.float32
        dot = lambda a, b: jnp.dot(a, b, preferred_element_type=f32)
        shift = _shift_matrix(t4, f32)          # built once per step; tiny

        x0 = xp_ref[0, 0]
        x1 = xp_ref[0, 1]
        x2 = xp_ref[0, 2]
        x3 = xp_ref[0, 3]
        b1 = b1_ref[...]                        # (2*C1, 1), lane-broadcast add

        # ---- stage 1 (stride 2): even / odd output-time phases ------------
        # out1[j] = act(b1 + W1[0] x[2j-1] + W1[1] x[2j] + W1[2] x[2j+1])
        x3m = dot(x3, shift)                    # x[4m-1]  (column 0 -> zero pad)
        z_e = dot(w1_ref[0], x3m) + dot(w1_ref[1], x0) + dot(w1_ref[2], x1) + b1
        z_o = dot(w1_ref[0], x1) + dot(w1_ref[1], x2) + dot(w1_ref[2], x3) + b1
        h_e = jnp.tanh(z_e[:c1]) * jax.nn.sigmoid(z_e[c1:])   # (C1, T4)
        h_o = jnp.tanh(z_o[:c1]) * jax.nn.sigmoid(z_o[c1:])

        # channel split (torch.split dim=1): embedding slab, lane-dense store
        e1_ref[0, 0] = h_e[:emb1].astype(e1_ref.dtype)
        e1_ref[0, 1] = h_o[:emb1].astype(e1_ref.dtype)

        # ---- stage 2 (stride 2) on the residual channels -------------------
        r_e = h_e[emb1:]                        # (C1-emb1, T4) == h1 at even j
        r_o = h_o[emb1:]                        #                 h1 at odd j
        r_m = dot(r_o, shift)                   # h1[2m-1]
        b2 = b2_ref[...]
        z2 = dot(w2_ref[0], r_m) + dot(w2_ref[1], r_e) + dot(w2_ref[2], r_o) + b2
        h2 = jnp.tanh(z2[:c2]) * jax.nn.sigmoid(z2[c2:])
        e2_ref[0] = h2[:emb2].astype(e2_ref.dtype)
        # residual channels of the last stage are discarded (as in the module).

    return kernel


# ------------------------------- wrapper ----------------------------------- #

def unet_encoder_forward(x_bft, params, encoder_cfgs, embedding_dims):
    """Mirrors UNetEncoder.forward (encoders_2d=None, use_batchnorm=False,
    list_c_bft=None) for the fused 2-stage, stride-2 configuration."""
    assert len(encoder_cfgs) == 2
    assert all(cfg["resample_rate"] == 2 for cfg in encoder_cfgs)
    (w1, b1), (w2, b2) = params
    emb1, emb2 = embedding_dims
    b, c0, t = x_bft.shape
    assert t % 4 == 0, "T must be divisible by the total stride (4)"
    t4 = t // 4
    c1 = encoder_cfgs[0]["output_dim"]
    c2 = encoder_cfgs[1]["output_dim"]
    assert w1.shape == (3, 2 * c1, c0)
    assert w2.shape == (3, 2 * c2, c1 - emb1)
    assert c1 >= emb1 and c2 >= emb2

    # phase-split the input (channel-major stays; no (B,F,T)->(B,T,C) transpose):
    # x4[b, p, :, m] = x[b, :, 4m + p]
    x4 = x_bft.reshape(b, c0, t4, 4).transpose(0, 3, 1, 2)

    # advisory cost estimate (f32 everywhere)
    flops = 2 * b * (c0 * t4 * t4 + (c1 - emb1) * t4 * t4
                     + 2 * 3 * (2 * c1) * c0 * t4
                     + 3 * (2 * c2) * (c1 - emb1) * t4)
    transcendentals = b * t4 * (4 * c1 + 2 * c2)
    bytes_accessed = 4 * (x4.size + w1.size + b1.size + w2.size + b2.size
                          + b * 2 * emb1 * t4 + b * emb2 * t4)

    kernel = _make_fused_kernel(c1, c2, emb1, emb2, t4)
    e1_ph, e2 = pl.pallas_call(
        kernel,
        out_shape=(
            jax.ShapeDtypeStruct((b, 2, emb1, t4), x_bft.dtype),
            jax.ShapeDtypeStruct((b, emb2, t4), x_bft.dtype),
        ),
        grid_spec=pltpu.PrefetchScalarGridSpec(
            num_scalar_prefetch=0,
            grid=(b,),                      # one step per batch, whole sequence resident
            in_specs=[
                pl.BlockSpec((1, 4, c0, t4), lambda i: (i, 0, 0, 0)),
                # weights/biases are grid-invariant and tiny; default buffering kept
                pl.BlockSpec(w1.shape, lambda i: (0, 0, 0)),
                pl.BlockSpec(b1.shape, lambda i: (0, 0)),
                pl.BlockSpec(w2.shape, lambda i: (0, 0, 0)),
                pl.BlockSpec(b2.shape, lambda i: (0, 0)),
            ],
            out_specs=[
                pl.BlockSpec((1, 2, emb1, t4), lambda i: (i, 0, 0, 0)),
                pl.BlockSpec((1, emb2, t4), lambda i: (i, 0, 0)),
            ],
        ),
        compiler_params=pltpu.CompilerParams(
            dimension_semantics=("parallel",),
            vmem_limit_bytes=32 * 1024 * 1024,
        ),
        cost_estimate=pl.CostEstimate(
            flops=int(flops),
            transcendentals=int(transcendentals),
            bytes_accessed=int(bytes_accessed),
        ),
    )(x4, w1, b1, w2, b2)

    # re-interleave stage-1 even/odd output phases: (B, 2, E1, T4) -> (B, E1, T/2)
    z1 = e1_ph.transpose(0, 2, 3, 1).reshape(b, emb1, 2 * t4)
    return [z1, e2]


# --------------------------- params & reference ---------------------------- #

def init_unet_encoder_params(key, encoder_cfgs, k=3, dtype=jnp.float32):
    """Per stage: tap-major weights (K, 2*C_out, C_in) with tanh half [:C_out]
    and gate half [C_out:], plus bias (2*C_out, 1).  (A transposed fold of the
    PyTorch Conv1d layout (2*C_out, C_in, K).)"""
    params = []
    for cfg in encoder_cfgs:
        key, kw, kb = jax.random.split(key, 3)
        c_in, c_out = cfg["input_dim"], cfg["output_dim"]
        scale = (c_in * k) ** -0.5
        w = jax.random.normal(kw, (k, 2 * c_out, c_in), dtype) * scale
        bias = jax.random.normal(kb, (2 * c_out, 1), dtype) * 0.01
        params.append((w, bias))
    return params


def unet_encoder_reference(x_bft, params, encoder_cfgs, embedding_dims):
    """Pure-JAX reference of the same synthesized encoder stack."""
    h = x_bft
    outs = []
    for (w, bias), cfg, dim in zip(params, encoder_cfgs, embedding_dims):
        stride = cfg["resample_rate"]
        c_out = cfg["output_dim"]
        bsz, _, t = h.shape
        t_out = t // stride
        xp = jnp.pad(h, ((0, 0), (0, 0), (1, 1)))
        z = jnp.broadcast_to(bias[None], (bsz, 2 * c_out, t_out)).astype(jnp.float32)
        for k in range(3):
            tap = xp[:, :, k:k + stride * t_out:stride]
            z = z + jnp.einsum("oc,bct->bot", w[k], tap,
                               precision=jax.lax.Precision.HIGHEST)
        h_full = jnp.tanh(z[:, :c_out]) * jax.nn.sigmoid(z[:, c_out:])
        outs.append(h_full[:, :dim].astype(x_bft.dtype))
        h = h_full[:, dim:].astype(x_bft.dtype)
    return outs


# --------------------------------- demo ------------------------------------ #

if __name__ == "__main__":
    B, F, T = 4, 16, 512   # T/4 = 128 -> lane-dense output blocks

    encoder_cfgs = [
        {"input_dim": 16, "output_dim": 32, "resample_rate": 2},
        {"input_dim": 24, "output_dim": 32, "resample_rate": 2},
    ]
    embedding_dims = [8, 16]

    key = jax.random.PRNGKey(0)
    key, kx = jax.random.split(key)
    x_bft = jax.random.normal(kx, (B, F, T), jnp.float32)
    params = init_unet_encoder_params(key, encoder_cfgs)

    fwd = jax.jit(lambda x, p: unet_encoder_forward(x, p, encoder_cfgs, embedding_dims))
    list_z = fwd(x_bft, params)
    list_z = [jax.block_until_ready(z) for z in list_z]

    expected_shapes = [(B, embedding_dims[0], T // 2), (B, embedding_dims[1], T // 4)]
    for z, s in zip(list_z, expected_shapes):
        assert z.shape == s, (z.shape, s)
        assert bool(jnp.all(jnp.isfinite(z)))

    # numerics vs. the pure-JAX reference (tolerance covers MXU f32-pass
    # differences between Mosaic and the XLA HIGHEST-precision einsum)
    refs = unet_encoder_reference(x_bft, params, encoder_cfgs, embedding_dims)
    for z, r in zip(list_z, refs):
        err = float(jnp.max(jnp.abs(z - r)))
        assert err < 2e-2, f"max abs error {err}"

    print("KERNEL_OK")
</pallas_src>

<mosaic_0001>
module attributes {stable_mosaic.version = 11 : i64} {
  func.func @kernel(%arg0: i32, %arg1: memref<1x4x16x128xf32, #tpu.memory_space<vmem>>, %arg2: memref<3x64x16xf32, #tpu.memory_space<vmem>>, %arg3: memref<64x1xf32, #tpu.memory_space<vmem>>, %arg4: memref<3x64x24xf32, #tpu.memory_space<vmem>>, %arg5: memref<64x1xf32, #tpu.memory_space<vmem>>, %arg6: memref<1x2x8x128xf32, #tpu.memory_space<vmem>>, %arg7: memref<1x16x128xf32, #tpu.memory_space<vmem>>) attributes {dimension_semantics = [#tpu.dimension_semantics<parallel>], iteration_bounds = array<i64: 4>, scalar_prefetch = 0 : i64, scratch_operands = 0 : i64, tpu.core_type = #tpu.core_type<tc>, window_params = [{transform_indices = @transform_0, window_bounds = array<i64: 1, 4, 16, 128>}, {pipeline_mode = #tpu.pipeline_mode<synchronous>, transform_indices = @transform_1, window_bounds = array<i64: 3, 64, 16>}, {pipeline_mode = #tpu.pipeline_mode<synchronous>, transform_indices = @transform_2, window_bounds = array<i64: 64, 1>}, {pipeline_mode = #tpu.pipeline_mode<synchronous>, transform_indices = @transform_3, window_bounds = array<i64: 3, 64, 24>}, {pipeline_mode = #tpu.pipeline_mode<synchronous>, transform_indices = @transform_4, window_bounds = array<i64: 64, 1>}, {transform_indices = @transform_5, window_bounds = array<i64: 1, 2, 8, 128>}, {transform_indices = @transform_6, window_bounds = array<i64: 1, 16, 128>}]} {
    %0 = tpu.iota {dimensions = array<i32: 0>} : vector<128x128xi32>
    %1 = tpu.iota {dimensions = array<i32: 1>} : vector<128x128xi32>
    %c1_i32 = arith.constant 1 : i32
    %2 = vector.broadcast %c1_i32 : i32 to vector<128x128xi32>
    %3 = arith.addi %0, %2 : vector<128x128xi32>
    %4 = arith.cmpi eq, %3, %1 : vector<128x128xi32>
    %5 = arith.extui %4 : vector<128x128xi1> to vector<128x128xi32>
    %6 = arith.sitofp %5 : vector<128x128xi32> to vector<128x128xf32>
    %c0 = arith.constant 0 : index
    %c0_0 = arith.constant 0 : index
    %c0_1 = arith.constant 0 : index
    %c0_2 = arith.constant 0 : index
    %7 = vector.load %arg1[%c0, %c0_0, %c0_1, %c0_2] : memref<1x4x16x128xf32, #tpu.memory_space<vmem>>, vector<1x1x16x128xf32>
    %8 = vector.shape_cast %7 : vector<1x1x16x128xf32> to vector<16x128xf32>
    %c0_3 = arith.constant 0 : index
    %c1 = arith.constant 1 : index
    %c0_4 = arith.constant 0 : index
    %c0_5 = arith.constant 0 : index
    %9 = vector.load %arg1[%c0_3, %c1, %c0_4, %c0_5] : memref<1x4x16x128xf32, #tpu.memory_space<vmem>>, vector<1x1x16x128xf32>
    %10 = vector.shape_cast %9 : vector<1x1x16x128xf32> to vector<16x128xf32>
    %c0_6 = arith.constant 0 : index
    %c2 = arith.constant 2 : index
    %c0_7 = arith.constant 0 : index
    %c0_8 = arith.constant 0 : index
    %11 = vector.load %arg1[%c0_6, %c2, %c0_7, %c0_8] : memref<1x4x16x128xf32, #tpu.memory_space<vmem>>, vector<1x1x16x128xf32>
    %12 = vector.shape_cast %11 : vector<1x1x16x128xf32> to vector<16x128xf32>
    %c0_9 = arith.constant 0 : index
    %c3 = arith.constant 3 : index
    %c0_10 = arith.constant 0 : index
    %c0_11 = arith.constant 0 : index
    %13 = vector.load %arg1[%c0_9, %c3, %c0_10, %c0_11] : memref<1x4x16x128xf32, #tpu.memory_space<vmem>>, vector<1x1x16x128xf32>
    %14 = vector.shape_cast %13 : vector<1x1x16x128xf32> to vector<16x128xf32>
    %c0_12 = arith.constant 0 : index
    %c0_13 = arith.constant 0 : index
    %15 = vector.load %arg3[%c0_12, %c0_13] : memref<64x1xf32, #tpu.memory_space<vmem>>, vector<64x1xf32>
    %cst = arith.constant dense<0.000000e+00> : vector<16x128xf32>
    %16 = tpu.matmul %14, %6, %cst {dimension_numbers = #tpu.dot_dimension_numbers<[1], [0], [0], [1], [0, 0, 1, 1], [], []>} : vector<16x128xf32>, vector<128x128xf32>, vector<16x128xf32> -> vector<16x128xf32>
    %c0_14 = arith.constant 0 : index
    %c0_15 = arith.constant 0 : index
    %c0_16 = arith.constant 0 : index
    %17 = vector.load %arg2[%c0_14, %c0_15, %c0_16] : memref<3x64x16xf32, #tpu.memory_space<vmem>>, vector<1x64x16xf32>
    %18 = vector.shape_cast %17 : vector<1x64x16xf32> to vector<64x16xf32>
    %cst_17 = arith.constant dense<0.000000e+00> : vector<64x128xf32>
    %19 = tpu.matmul %18, %16, %cst_17 {dimension_numbers = #tpu.dot_dimension_numbers<[1], [0], [0], [1], [0, 0, 1, 1], [], []>} : vector<64x16xf32>, vector<16x128xf32>, vector<64x128xf32> -> vector<64x128xf32>
    %c1_18 = arith.constant 1 : index
    %c0_19 = arith.constant 0 : index
    %c0_20 = arith.constant 0 : index
    %20 = vector.load %arg2[%c1_18, %c0_19, %c0_20] : memref<3x64x16xf32, #tpu.memory_space<vmem>>, vector<1x64x16xf32>
    %21 = vector.shape_cast %20 : vector<1x64x16xf32> to vector<64x16xf32>
    %cst_21 = arith.constant dense<0.000000e+00> : vector<64x128xf32>
    %22 = tpu.matmul %21, %8, %cst_21 {dimension_numbers = #tpu.dot_dimension_numbers<[1], [0], [0], [1], [0, 0, 1, 1], [], []>} : vector<64x16xf32>, vector<16x128xf32>, vector<64x128xf32> -> vector<64x128xf32>
    %23 = arith.addf %19, %22 : vector<64x128xf32>
    %c2_22 = arith.constant 2 : index
    %c0_23 = arith.constant 0 : index
    %c0_24 = arith.constant 0 : index
    %24 = vector.load %arg2[%c2_22, %c0_23, %c0_24] : memref<3x64x16xf32, #tpu.memory_space<vmem>>, vector<1x64x16xf32>
    %25 = vector.shape_cast %24 : vector<1x64x16xf32> to vector<64x16xf32>
    %cst_25 = arith.constant dense<0.000000e+00> : vector<64x128xf32>
    %26 = tpu.matmul %25, %10, %cst_25 {dimension_numbers = #tpu.dot_dimension_numbers<[1], [0], [0], [1], [0, 0, 1, 1], [], []>} : vector<64x16xf32>, vector<16x128xf32>, vector<64x128xf32> -> vector<64x128xf32>
    %27 = arith.addf %23, %26 : vector<64x128xf32>
    %28 = vector.broadcast %15 : vector<64x1xf32> to vector<64x128xf32>
    %29 = arith.addf %27, %28 : vector<64x128xf32>
    %c0_26 = arith.constant 0 : index
    %c0_27 = arith.constant 0 : index
    %c0_28 = arith.constant 0 : index
    %30 = vector.load %arg2[%c0_26, %c0_27, %c0_28] : memref<3x64x16xf32, #tpu.memory_space<vmem>>, vector<1x64x16xf32>
    %31 = vector.shape_cast %30 : vector<1x64x16xf32> to vector<64x16xf32>
    %cst_29 = arith.constant dense<0.000000e+00> : vector<64x128xf32>
    %32 = tpu.matmul %31, %10, %cst_29 {dimension_numbers = #tpu.dot_dimension_numbers<[1], [0], [0], [1], [0, 0, 1, 1], [], []>} : vector<64x16xf32>, vector<16x128xf32>, vector<64x128xf32> -> vector<64x128xf32>
    %c1_30 = arith.constant 1 : index
    %c0_31 = arith.constant 0 : index
    %c0_32 = arith.constant 0 : index
    %33 = vector.load %arg2[%c1_30, %c0_31, %c0_32] : memref<3x64x16xf32, #tpu.memory_space<vmem>>, vector<1x64x16xf32>
    %34 = vector.shape_cast %33 : vector<1x64x16xf32> to vector<64x16xf32>
    %cst_33 = arith.constant dense<0.000000e+00> : vector<64x128xf32>
    %35 = tpu.matmul %34, %12, %cst_33 {dimension_numbers = #tpu.dot_dimension_numbers<[1], [0], [0], [1], [0, 0, 1, 1], [], []>} : vector<64x16xf32>, vector<16x128xf32>, vector<64x128xf32> -> vector<64x128xf32>
    %36 = arith.addf %32, %35 : vector<64x128xf32>
    %c2_34 = arith.constant 2 : index
    %c0_35 = arith.constant 0 : index
    %c0_36 = arith.constant 0 : index
    %37 = vector.load %arg2[%c2_34, %c0_35, %c0_36] : memref<3x64x16xf32, #tpu.memory_space<vmem>>, vector<1x64x16xf32>
    %38 = vector.shape_cast %37 : vector<1x64x16xf32> to vector<64x16xf32>
    %cst_37 = arith.constant dense<0.000000e+00> : vector<64x128xf32>
    %39 = tpu.matmul %38, %14, %cst_37 {dimension_numbers = #tpu.dot_dimension_numbers<[1], [0], [0], [1], [0, 0, 1, 1], [], []>} : vector<64x16xf32>, vector<16x128xf32>, vector<64x128xf32> -> vector<64x128xf32>
    %40 = arith.addf %36, %39 : vector<64x128xf32>
    %41 = vector.broadcast %15 : vector<64x1xf32> to vector<64x128xf32>
    %42 = arith.addf %40, %41 : vector<64x128xf32>
    %43 = vector.extract_strided_slice %29 {offsets = [0, 0], sizes = [32, 128], strides = [1, 1]} : vector<64x128xf32> to vector<32x128xf32>
    %44 = math.tanh %43 : vector<32x128xf32>
    %45 = vector.extract_strided_slice %29 {offsets = [32, 0], sizes = [32, 128], strides = [1, 1]} : vector<64x128xf32> to vector<32x128xf32>
    %46 = arith.negf %45 : vector<32x128xf32>
    %47 = math.exp %46 : vector<32x128xf32>
    %cst_38 = arith.constant 1.000000e+00 : f32
    %48 = vector.broadcast %cst_38 : f32 to vector<32x128xf32>
    %49 = arith.addf %48, %47 : vector<32x128xf32>
    %50 = arith.divf %48, %49 : vector<32x128xf32>
    %51 = arith.mulf %44, %50 : vector<32x128xf32>
    %52 = vector.extract_strided_slice %42 {offsets = [0, 0], sizes = [32, 128], strides = [1, 1]} : vector<64x128xf32> to vector<32x128xf32>
    %53 = math.tanh %52 : vector<32x128xf32>
    %54 = vector.extract_strided_slice %42 {offsets = [32, 0], sizes = [32, 128], strides = [1, 1]} : vector<64x128xf32> to vector<32x128xf32>
    %55 = arith.negf %54 : vector<32x128xf32>
    %56 = math.exp %55 : vector<32x128xf32>
    %cst_39 = arith.constant 1.000000e+00 : f32
    %57 = vector.broadcast %cst_39 : f32 to vector<32x128xf32>
    %58 = arith.addf %57, %56 : vector<32x128xf32>
    %59 = arith.divf %57, %58 : vector<32x128xf32>
    %60 = arith.mulf %53, %59 : vector<32x128xf32>
    %61 = vector.extract_strided_slice %51 {offsets = [0, 0], sizes = [8, 128], strides = [1, 1]} : vector<32x128xf32> to vector<8x128xf32>
    %c0_40 = arith.constant 0 : index
    %c0_41 = arith.constant 0 : index
    %c0_42 = arith.constant 0 : index
    %c0_43 = arith.constant 0 : index
    %62 = vector.load %arg6[%c0_40, %c0_41, %c0_42, %c0_43] : memref<1x2x8x128xf32, #tpu.memory_space<vmem>>, vector<1x1x8x128xf32>
    %63 = vector.shape_cast %62 : vector<1x1x8x128xf32> to vector<8x128xf32>
    %64 = vector.shape_cast %61 : vector<8x128xf32> to vector<1x1x8x128xf32>
    tpu.vector_store %arg6[%c0_40, %c0_41, %c0_42, %c0_43], %64 {strides = array<i32>} : memref<1x2x8x128xf32, #tpu.memory_space<vmem>>, vector<1x1x8x128xf32>,
    %65 = vector.extract_strided_slice %60 {offsets = [0, 0], sizes = [8, 128], strides = [1, 1]} : vector<32x128xf32> to vector<8x128xf32>
    %c0_44 = arith.constant 0 : index
    %c1_45 = arith.constant 1 : index
    %c0_46 = arith.constant 0 : index
    %c0_47 = arith.constant 0 : index
    %66 = vector.load %arg6[%c0_44, %c1_45, %c0_46, %c0_47] : memref<1x2x8x128xf32, #tpu.memory_space<vmem>>, vector<1x1x8x128xf32>
    %67 = vector.shape_cast %66 : vector<1x1x8x128xf32> to vector<8x128xf32>
    %68 = vector.shape_cast %65 : vector<8x128xf32> to vector<1x1x8x128xf32>
    tpu.vector_store %arg6[%c0_44, %c1_45, %c0_46, %c0_47], %68 {strides = array<i32>} : memref<1x2x8x128xf32, #tpu.memory_space<vmem>>, vector<1x1x8x128xf32>,
    %69 = vector.extract_strided_slice %51 {offsets = [8, 0], sizes = [24, 128], strides = [1, 1]} : vector<32x128xf32> to vector<24x128xf32>
    %70 = vector.extract_strided_slice %60 {offsets = [8, 0], sizes = [24, 128], strides = [1, 1]} : vector<32x128xf32> to vector<24x128xf32>
    %cst_48 = arith.constant dense<0.000000e+00> : vector<24x128xf32>
    %71 = tpu.matmul %70, %6, %cst_48 {dimension_numbers = #tpu.dot_dimension_numbers<[1], [0], [0], [1], [0, 0, 1, 1], [], []>} : vector<24x128xf32>, vector<128x128xf32>, vector<24x128xf32> -> vector<24x128xf32>
    %c0_49 = arith.constant 0 : index
    %c0_50 = arith.constant 0 : index
    %72 = vector.load %arg5[%c0_49, %c0_50] : memref<64x1xf32, #tpu.memory_space<vmem>>, vector<64x1xf32>
    %c0_51 = arith.constant 0 : index
    %c0_52 = arith.constant 0 : index
    %c0_53 = arith.constant 0 : index
    %73 = vector.load %arg4[%c0_51, %c0_52, %c0_53] : memref<3x64x24xf32, #tpu.memory_space<vmem>>, vector<1x64x24xf32>
    %74 = vector.shape_cast %73 : vector<1x64x24xf32> to vector<64x24xf32>
    %cst_54 = arith.constant dense<0.000000e+00> : vector<64x128xf32>
    %75 = tpu.matmul %74, %71, %cst_54 {dimension_numbers = #tpu.dot_dimension_numbers<[1], [0], [0], [1], [0, 0, 1, 1], [], []>} : vector<64x24xf32>, vector<24x128xf32>, vector<64x128xf32> -> vector<64x128xf32>
    %c1_55 = arith.constant 1 : index
    %c0_56 = arith.constant 0 : index
    %c0_57 = arith.constant 0 : index
    %76 = vector.load %arg4[%c1_55, %c0_56, %c0_57] : memref<3x64x24xf32, #tpu.memory_space<vmem>>, vector<1x64x24xf32>
    %77 = vector.shape_cast %76 : vector<1x64x24xf32> to vector<64x24xf32>
    %cst_58 = arith.constant dense<0.000000e+00> : vector<64x128xf32>
    %78 = tpu.matmul %77, %69, %cst_58 {dimension_numbers = #tpu.dot_dimension_numbers<[1], [0], [0], [1], [0, 0, 1, 1], [], []>} : vector<64x24xf32>, vector<24x128xf32>, vector<64x128xf32> -> vector<64x128xf32>
    %79 = arith.addf %75, %78 : vector<64x128xf32>
    %c2_59 = arith.constant 2 : index
    %c0_60 = arith.constant 0 : index
    %c0_61 = arith.constant 0 : index
    %80 = vector.load %arg4[%c2_59, %c0_60, %c0_61] : memref<3x64x24xf32, #tpu.memory_space<vmem>>, vector<1x64x24xf32>
    %81 = vector.shape_cast %80 : vector<1x64x24xf32> to vector<64x24xf32>
    %cst_62 = arith.constant dense<0.000000e+00> : vector<64x128xf32>
    %82 = tpu.matmul %81, %70, %cst_62 {dimension_numbers = #tpu.dot_dimension_numbers<[1], [0], [0], [1], [0, 0, 1, 1], [], []>} : vector<64x24xf32>, vector<24x128xf32>, vector<64x128xf32> -> vector<64x128xf32>
    %83 = arith.addf %79, %82 : vector<64x128xf32>
    %84 = vector.broadcast %72 : vector<64x1xf32> to vector<64x128xf32>
    %85 = arith.addf %83, %84 : vector<64x128xf32>
    %86 = vector.extract_strided_slice %85 {offsets = [0, 0], sizes = [32, 128], strides = [1, 1]} : vector<64x128xf32> to vector<32x128xf32>
    %87 = math.tanh %86 : vector<32x128xf32>
    %88 = vector.extract_strided_slice %85 {offsets = [32, 0], sizes = [32, 128], strides = [1, 1]} : vector<64x128xf32> to vector<32x128xf32>
    %89 = arith.negf %88 : vector<32x128xf32>
    %90 = math.exp %89 : vector<32x128xf32>
    %cst_63 = arith.constant 1.000000e+00 : f32
    %91 = vector.broadcast %cst_63 : f32 to vector<32x128xf32>
    %92 = arith.addf %91, %90 : vector<32x128xf32>
    %93 = arith.divf %91, %92 : vector<32x128xf32>
    %94 = arith.mulf %87, %93 : vector<32x128xf32>
    %95 = vector.extract_strided_slice %94 {offsets = [0, 0], sizes = [16, 128], strides = [1, 1]} : vector<32x128xf32> to vector<16x128xf32>
    %c0_64 = arith.constant 0 : index
    %c0_65 = arith.constant 0 : index
    %c0_66 = arith.constant 0 : index
    %96 = vector.load %arg7[%c0_64, %c0_65, %c0_66] : memref<1x16x128xf32, #tpu.memory_space<vmem>>, vector<1x16x128xf32>
    %97 = vector.shape_cast %96 : vector<1x16x128xf32> to vector<16x128xf32>
    %98 = vector.shape_cast %95 : vector<16x128xf32> to vector<1x16x128xf32>
    tpu.vector_store %arg7[%c0_64, %c0_65, %c0_66], %98 {strides = array<i32>} : memref<1x16x128xf32, #tpu.memory_space<vmem>>, vector<1x16x128xf32>,
    return
  }
  func.func @transform_0(%arg0: i32) -> (i32, i32, i32, i32) {
    %c0_i32 = arith.constant 0 : i32
    %c0_i32_0 = arith.constant 0 : i32
    %c0_i32_1 = arith.constant 0 : i32
    %c0_i32_2 = arith.constant 0 : i32
    return %arg0, %c0_i32, %c0_i32_0, %c0_i32_1 : i32, i32, i32, i32
  }
  func.func @transform_1(%arg0: i32) -> (i32, i32, i32) {
    %c0_i32 = arith.constant 0 : i32
    %c0_i32_0 = arith.constant 0 : i32
    %c0_i32_1 = arith.constant 0 : i32
    %c0_i32_2 = arith.constant 0 : i32
    return %c0_i32, %c0_i32_0, %c0_i32_1 : i32, i32, i32
  }
  func.func @transform_2(%arg0: i32) -> (i32, i32) {
    %c0_i32 = arith.constant 0 : i32
    %c0_i32_0 = arith.constant 0 : i32
    %c0_i32_1 = arith.constant 0 : i32
    return %c0_i32, %c0_i32_0 : i32, i32
  }
  func.func @transform_3(%arg0: i32) -> (i32, i32, i32) {
    %c0_i32 = arith.constant 0 : i32
    %c0_i32_0 = arith.constant 0 : i32
    %c0_i32_1 = arith.constant 0 : i32
    %c0_i32_2 = arith.constant 0 : i32
    return %c0_i32, %c0_i32_0, %c0_i32_1 : i32, i32, i32
  }
  func.func @transform_4(%arg0: i32) -> (i32, i32) {
    %c0_i32 = arith.constant 0 : i32
    %c0_i32_0 = arith.constant 0 : i32
    %c0_i32_1 = arith.constant 0 : i32
    return %c0_i32, %c0_i32_0 : i32, i32
  }
  func.func @transform_5(%arg0: i32) -> (i32, i32, i32, i32) {
    %c0_i32 = arith.constant 0 : i32
    %c0_i32_0 = arith.constant 0 : i32
    %c0_i32_1 = arith.constant 0 : i32
    %c0_i32_2 = arith.constant 0 : i32
    return %arg0, %c0_i32, %c0_i32_0, %c0_i32_1 : i32, i32, i32, i32
  }
  func.func @transform_6(%arg0: i32) -> (i32, i32, i32) {
    %c0_i32 = arith.constant 0 : i32
    %c0_i32_0 = arith.constant 0 : i32
    %c0_i32_1 = arith.constant 0 : i32
    return %arg0, %c0_i32, %c0_i32_0 : i32, i32, i32
  }
}

</mosaic_0001>

<bundles_post_ra>
// kernel: _lambda_.1
= control target key start
LH: loop header
LB: loop body
LE: loop exit
PB: predicated region body
PF: predicated region fallthrough
CT: control target
= control target key end

     0   :  { %12 = vsyncpa [#allocation3], 0  ;;  %s3427_s0 = inlined_call_operand.vmem [shape: f32[4,4,16,128], index: 0, kind: input, shape index: {}]   ;;  %s3428_s1 = inlined_call_operand.vmem [shape: f32[3,64,16], index: 1, kind: input, shape index: {}]   ;;  %s3429_s2 = inlined_call_operand.vmem [shape: f32[64,1], index: 2, kind: input, shape index: {}]   ;;  %s3430_s3 = inlined_call_operand.vmem [shape: f32[3,64,24], index: 3, kind: input, shape index: {}]   ;;  %s3431_s4 = inlined_call_operand.vmem [shape: f32[64,1], index: 4, kind: input, shape index: {}]   ;;  %s3432_s5 = inlined_call_operand.vmem [shape: f32[4,2,8,128], index: 5, kind: output, shape index: {0}]   ;;  %s3433_s6 = inlined_call_operand.hbm [shape: f32[4,16,128], index: 6, kind: output, shape index: {1}]  }
   0x1   :  { %14 = vsyncpa [#allocation3 + $0x1], 0  ;;  %s2840_s21 = smov 0   ;;  %s2842_s22 = smov 0  }
   0x2   :  { %s2844_s23 = smov 0   ;;  %s2846_s24 = smov 0  }
   0x3 LB: > { %s2861_s25 = sadd.s32 4294967295, %s2795_s24   ;;  %s1949_s26 = sadd.s32 4294967294, %s2795_s24   ;;  %s2795_s24 = sphi %s2846_s24, %s3455_s24   ;;  %s2791_s23 = sphi %s2844_s23, %s3454_s23   ;;  %s2787_s22 = sphi %s2842_s22, %s3453_s22   ;;  %s2783_s21 = sphi %s2840_s21, %s3452_s21  }
   0x4   : > { %s2865_s27 = sadd.s32 1, %s2795_s24   ;;  %s163_s28 = sadd.s32 1, %s2791_s23 }
   0x5   : > { %s160_s29 = ssub.s32 %s2795_s24, %s2865_s27  ;;  %p173_p0 = scmp.ne.s32.totalorder %s2791_s23, %s2787_s22 }
   0x6   : > { %p161_p1 = scmp.eq.s32.totalorder %s160_s29, 0  ;;  %p174_p2 = scmp.eq.s32.totalorder %s2861_s25, 3 }
   0x7   : > { %p179_p3 = scmp.ne.s32.totalorder %s2787_s22, %s2783_s21  ;;  %p180_p4 = scmp.eq.s32.totalorder %s1949_s26, 3 }
   0x8   : > { %s2876_s30 = scalar_select %p161_p1, %s2791_s23, %s163_s28  }
   0x9   : > { %p2878_p5 = por %p174_p2, %p173_p0  ;;  %p2882_p6 = por %p180_p4, %p179_p3 }
   0xa   : > { %p1952_p7 = scmp.ge.s32.totalorder %s2795_s24, 1  ;;  %p218_p8 = scmp.lt.s32.totalorder %s2795_s24, 5 }
   0xc   : > { %p219_p9 = pnand %p1952_p7, %p218_p8 }
   0xd   : > { %v263_v0 = vlaneseq (!%p219_p9)  ;;  %p253_p10 = scmp.lt.s32.totalorder (!%p219_p9), %s2861_s25, 3  ;;  %v2797_v21 = vmov (!%p219_p9), 1.0|1.0   ;;  %v3005_v49 = vld [vmem:[%s3428_s1 + $0x40] sm:$0xff] (!%p219_p9)  ;;  %v3012_v50 = vld [vmem:[%s3428_s1 + $0x48] sm:$0xff] (!%p219_p9)  ;;  %v3017_v51 = vld [vmem:[%s3428_s1 + $0x50] sm:$0xff] (!%p219_p9) }
   0xe   : > { %222 = sbr.rel (%p219_p9) target bundleno = 1068 (0x42c), region = 40  ;;  %v3026_v52 = vld [vmem:[%s3428_s1 + $0x58] sm:$0xff] (!%p219_p9)  ;;  %v3031_v53 = vld [vmem:[%s3428_s1 + $0x60] sm:$0xff] (!%p219_p9)  ;;  %v3040_v54 = vld [vmem:[%s3428_s1 + $0x68] sm:$0xff] (!%p219_p9)  ;;  %v2798_v60 = vmov (!%p219_p9), 0   ;;  %v2801_v17 = vmov (!%p219_p9), 0.0  }
   0xf   : > { %v264_v1 = vshrl.u32 (!%p219_p9), %v263_v0, 7  ;;  %v2889_v2 = vand.u32 (!%p219_p9), 127, %v263_v0  ;;  %v3047_v55 = vld [vmem:[%s3428_s1 + $0x70] sm:$0xff] (!%p219_p9)  ;;  %v3054_v56 = vld [vmem:[%s3428_s1 + $0x78] sm:$0xff] (!%p219_p9)  ;;  %v3061_v57 = vld [vmem:[%s3428_s1] sm:$0xff] (!%p219_p9)  ;;  %2672 = vset.pattern.permute.xlu1 (!%p219_p9), %v2798_v60  ;;  %2671 = vset.pattern.permute.xlu0 (!%p219_p9), %v2798_v60  ;;  %s2134_s12 = sshll.u32 (!%p219_p9), %s2861_s25, 8 }
  0x10   : > { %v3066_v58 = vld [vmem:[%s3428_s1 + $0x10] sm:$0xff] (!%p219_p9)  ;;  %v364_v59 = vld [vmem:[%s3429_s2 + $0x38] sm:$0xff] (!%p219_p9)  ;;  %v362_v61 = vld [vmem:[%s3429_s2 + $0x28] sm:$0xff] (!%p219_p9)  ;;  %s3382_s18 = scalar_lea.hbm (!%p219_p9), %s3433_s6, %s2134_s12  ;;  %s2802_s20 = smov (!%p219_p9), [#allocation2]  }
  0x11   : > { %v265_v3 = vadd.s32 (!%p219_p9), 8, %v264_v1  ;;  %v282_v4 = vadd.s32 (!%p219_p9), 1, %v264_v1  ;;  %v266_v5 = vadd.s32 (!%p219_p9), 16, %v264_v1  ;;  %v267_v6 = vadd.s32 (!%p219_p9), 24, %v264_v1  ;;  %899 = vperm.xlu1 (!%p219_p9), %2672, %v364_v59   ;;  %889 = vperm.xlu0 (!%p219_p9), %2671, %v362_v61   ;;  %v358_v62 = vld [vmem:[%s3429_s2 + $0x8] sm:$0xff] (!%p219_p9)  ;;  %v363_v63 = vld [vmem:[%s3429_s2 + $0x30] sm:$0xff] (!%p219_p9) }
  0x12   : > { %v268_v7 = vadd.s32 (!%p219_p9), 32, %v264_v1  ;;  %v269_v8 = vadd.s32 (!%p219_p9), 40, %v264_v1  ;;  %v270_v9 = vadd.s32 (!%p219_p9), 48, %v264_v1  ;;  %v271_v10 = vadd.s32 (!%p219_p9), 56, %v264_v1  ;;  %v360_v0 = vld [vmem:[%s3429_s2 + $0x18] sm:$0xff] (!%p219_p9)  ;;  %s2737_s26 = sshll.u32 (!%p219_p9), %s2802_s20, 4  ;;  %s2738_s26 = int_to_ptr.vmem [resolvable:$false] %s2737_s26 }
  0x13   : > { %v283_v11 = vadd.s32 (!%p219_p9), 1, %v265_v3  ;;  %vm298_vm0 = vcmp.eq.s32.totalorder (!%p219_p9), %v282_v4, %v2889_v2  ;;  %v284_v12 = vadd.s32 (!%p219_p9), 1, %v266_v5  ;;  %v285_v13 = vadd.s32 (!%p219_p9), 1, %v267_v6  ;;  %v1390_v3 = vld [vmem:[%s3431_s4 + $0x20] sm:$0xff] (!%p219_p9) }
  0x14   : > { %v286_v15 = vadd.s32 (!%p219_p9), 1, %v268_v7  ;;  %v287_v16 = vadd.s32 (!%p219_p9), 1, %v269_v8  ;;  %v288_v18 = vadd.s32 (!%p219_p9), 1, %v270_v9  ;;  %v289_v19 = vadd.s32 (!%p219_p9), 1, %v271_v10  ;;  %v1388_v4 = vld [vmem:[%s3431_s4] sm:$0xff] (!%p219_p9)  ;;  %v1389_v7 = vld [vmem:[%s3431_s4 + $0x8] sm:$0xff] (!%p219_p9) }
  0x15   : > { %s2892_s9 = scalar_select %p253_p10, %s2861_s25, 3  ;;  %vm299_vm1 = vcmp.eq.s32.totalorder %v283_v11, %v2889_v2  ;;  %vm300_vm2 = vcmp.eq.s32.totalorder %v284_v12, %v2889_v2  ;;  %vm301_vm3 = vcmp.eq.s32.totalorder %v285_v13, %v2889_v2  ;;  %v272_v20 = vadd.s32 64, %v264_v1  ;;  %869 = vperm.xlu1 %2672, %v358_v62   ;;  %894 = vperm.xlu0 %2671, %v363_v63   ;;  %v361_v5 = vld [vmem:[%s3429_s2 + $0x20] sm:$0xff] }
  0x16   : > { %vm2905_vm4 = vmpackc.low %vm299_vm1, %vm298_vm0  ;;  %vm302_vm6 = vcmp.eq.s32.totalorder %v286_v15, %v2889_v2  ;;  %vm303_vm7 = vcmp.eq.s32.totalorder %v287_v16, %v2889_v2  ;;  %v273_v23 = vadd.s32 72, %v264_v1  ;;  %vm304_vm9 = vcmp.eq.s32.totalorder %v288_v18, %v2889_v2  ;;  %v357_v6 = vld [vmem:[%s3429_s2] sm:$0xff]  ;;  %v441_v18 = vld [vmem:[%s3428_s1 + $0x8] sm:$0xff] }
  0x17   : > { %s2132_s10 = sshll.u32 %s2892_s9, 6  ;;  %2492 = vmatprep.subr.msk.bf16.mxu0 %vm2905_vm4, %v2797_v21  ;;  %vm2912_vm5 = vmpackc.low %vm301_vm3, %vm300_vm2  ;;  %vm305_vm10 = vcmp.eq.s32.totalorder %v289_v19, %v2889_v2  ;;  %v290_v25 = vadd.s32 1, %v272_v20  ;;  %v274_v28 = vadd.s32 80, %v264_v1  ;;  %v275_v29 = vadd.s32 88, %v264_v1  ;;  %v443_v19 = vld [vmem:[%s3428_s1 + $0x18] sm:$0xff]  ;;  %v444_v20 = vld [vmem:[%s3428_s1 + $0x20] sm:$0xff] }
  0x18   : > { %s2898_s13 = scalar_lea.vmem %s3427_s0, %s2132_s10  ;;  %2494 = vmatpush3.bf16.msk.msra.mxu0 %vm2905_vm4, %v2797_v21  ;;  %vm2924_vm8 = vmpackc.low %vm303_vm7, %vm302_vm6  ;;  %v291_v27 = vadd.s32 1, %v273_v23  ;;  %v276_v32 = vadd.s32 96, %v264_v1  ;;  %v277_v33 = vadd.s32 104, %v264_v1  ;;  %v278_v37 = vadd.s32 112, %v264_v1  ;;  %s2133_s19 = sshll.u32 %s2892_s9, 4 }
  0x19   : > { %v1978_v14 = vld [vmem:[%s2898_s13 + $0x30] sm:$0xff]  ;;  %2496 = vmatprep.subr.msk.bf16.mxu0 %vm2912_vm5, %v2797_v21  ;;  %v1979_v26 = vld [vmem:[%s2898_s13 + $0x38] sm:$0xff]  ;;  %vm2939_vm11 = vmpackc.low %vm305_vm10, %vm304_vm9  ;;  %vm306_vm12 = vcmp.eq.s32.totalorder %v290_v25, %v2889_v2  ;;  %v292_v34 = vadd.s32 1, %v274_v28  ;;  %v293_v35 = vadd.s32 1, %v275_v29  ;;  %v279_v38 = vadd.s32 120, %v264_v1  ;;  %879 = vperm.xlu1 %2672, %v360_v0   ;;  %s3267_s28 = scalar_lea.vmem %s3432_s5, %s2133_s19  ;;  %s250_s10 = sand.u32 1, %s2787_s22  }
  0x1a   : > { %2297 = vmatprep.mubr.f32.mxu0 %v1978_v14  ;;  %v2931_v30 = vpack.c.bf16 %v1979_v26, %v1978_v14  ;;  %vm307_vm13 = vcmp.eq.s32.totalorder %v291_v27, %v2889_v2  ;;  %v294_v39 = vadd.s32 1, %v276_v32  ;;  %v295_v40 = vadd.s32 1, %v277_v33  ;;  %v346_v46 = vld [vmem:[%s2898_s13] sm:$0xff]  ;;  %v347_v47 = vld [vmem:[%s2898_s13 + $0x8] sm:$0xff]  ;;  %v359_v1 = vld [vmem:[%s3429_s2 + $0x10] sm:$0xff]  ;;  %s1953_s11 = sshll.u32 %s250_s10, 4 }
  0x1b   : > { %vm2951_vm14 = vmpackc.low %vm307_vm13, %vm306_vm12  ;;  %vm308_vm15 = vcmp.eq.s32.totalorder %v292_v34, %v2889_v2  ;;  %vm309_vm0 = vcmp.eq.s32.totalorder %v293_v35, %v2889_v2  ;;  %v296_v42 = vadd.s32 1, %v278_v37  ;;  %v297_v43 = vadd.s32 1, %v279_v38  ;;  %874 = vperm.xlu0 %2671, %v359_v1   ;;  %v1976_v8 = vld [vmem:[%s2898_s13 + $0x20] sm:$0xff]  ;;  %v1977_v9 = vld [vmem:[%s2898_s13 + $0x28] sm:$0xff]  ;;  %s252_s14 = scalar_lea.vmem [#allocation2], %s1953_s11  ;;  %s3386_s25 = scalar_lea.sflag [#allocation3], %s250_s10 }
  0x1c   : > { %2498 = vmatpush3.bf16.msk.msra.mxu0 %vm2912_vm5, %v2797_v21  ;;  %vm2963_vm1 = vmpackc.low %vm309_vm0, %vm308_vm15  ;;  %vm310_vm2 = vcmp.eq.s32.totalorder %v294_v39, %v2889_v2  ;;  %vm311_vm3 = vcmp.eq.s32.totalorder %v295_v40, %v2889_v2  ;;  %v2523_v48 = vpack.c.bf16 %v347_v47, %v346_v46  ;;  %vm457_vm12 = vcmask 130048   ;;  %v1974_v10 = vld [vmem:[%s2898_s13 + $0x10] sm:$0xff]  ;;  %v1975_v11 = vld [vmem:[%s2898_s13 + $0x18] sm:$0xff]  ;;  %s1862_s15 = sshll.u32 %s252_s14, 4  ;;  %s3384_s15 = int_to_ptr.vmem [resolvable:$true] %s1862_s15 }
  0x1d   : > { %2500 = vmatprep.subr.msk.bf16.mxu0 %vm2924_vm8, %v2797_v21  ;;  %vm2975_vm6 = vmpackc.low %vm311_vm3, %vm310_vm2  ;;  %vm312_vm7 = vcmp.eq.s32.totalorder %v296_v42, %v2889_v2  ;;  %vm313_vm9 = vcmp.eq.s32.totalorder %v297_v43, %v2889_v2  ;;  %2323 = vmatprep.mubr.msk.f32.mxu1 %vm457_vm12, %v3066_v58  ;;  %v1391_v2 = vld [vmem:[%s3431_s4 + $0x28] sm:$0xff]  ;;  %v2535_v15 = vpack.c.bf16 %v1977_v9, %v1976_v8  ;;  %v446_v27 = vld [vmem:[%s3428_s1 + $0x30] sm:$0xff]  ;;  %v2799_v46 = vmov 0.0|0.0   ;;  %s2733_s19 = scalar_lea.vmem %s3384_s15, 256  ;;  %p2740_p0 = scmp.lt.s32.totalorder %s3384_s15, %s2738_s26 }
  0x1e   : > { %vm2987_vm10 = vmpackc.low %vm313_vm9, %vm312_vm7  ;;  %1815 = vperm.xlu1 %2672, %v1391_v2   ;;  %v2531_v16 = vpack.c.bf16 %v1975_v11, %v1974_v10  ;;  %v445_v25 = vld [vmem:[%s3428_s1 + $0x28] sm:$0xff]  ;;  %v447_v28 = vld [vmem:[%s3428_s1 + $0x38] sm:$0xff]  ;;  %p2734_p11 = scmp.ne.s32.totalorder %s3384_s15, %s2733_s19 }
  0x1f   : > { %1810 = vperm.xlu0 %2671, %v1390_v3   ;;  %v2020_v29 = vld [vmem:[%s3428_s1 + $0x80] sm:$0xff]  ;;  %v2021_v32 = vld [vmem:[%s3428_s1 + $0x88] sm:$0xff]  ;;  %v2022_v33 = vld [vmem:[%s3428_s1 + $0x90] sm:$0xff] }
  0x20   : > { %2502 = vmatpush3.bf16.msk.msra.mxu0 %vm2924_vm8, %v2797_v21  ;;  %v2023_v34 = vld [vmem:[%s3428_s1 + $0x98] sm:$0xff]  ;;  %v2024_v35 = vld [vmem:[%s3428_s1 + $0xa0] sm:$0xff]  ;;  %v2025_v37 = vld [vmem:[%s3428_s1 + $0xa8] sm:$0xff]  ;;  %p2735_p12 = pnand %p2734_p11, %p2878_p5 }
  0x21   : > { %2504 = vmatprep.subr.msk.bf16.mxu0 %vm2939_vm11, %v2797_v21  ;;  %v2026_v38 = vld [vmem:[%s3428_s1 + $0xb0] sm:$0xff]  ;;  %v2027_v39 = vld [vmem:[%s3428_s1 + $0xb8] sm:$0xff] }
  0x22   : > { %1800 = vperm.xlu1 %2672, %v1388_v4   ;;  %p2736_p13 = pneg %p2735_p12 }
  0x23   : > { %884 = vperm.xlu0 %2671, %v361_v5  }
  0x24   : > { %2506 = vmatpush3.bf16.msk.msra.mxu0 %vm2939_vm11, %v2797_v21 }
  0x25   : > { %2508 = vmatprep.subr.msk.bf16.mxu0 %vm2951_vm14, %v2797_v21 }
  0x26   : > { %864 = vperm.xlu1 %2672, %v357_v6  }
  0x27   : > { %1805 = vperm.xlu0 %2671, %v1389_v7  }
  0x28   : > { %2510 = vmatpush3.bf16.msk.msra.mxu0 %vm2951_vm14, %v2797_v21 }
  0x29   : > { %2512 = vmatprep.subr.msk.bf16.mxu0 %vm2963_vm1, %v2797_v21 }
  0x2c   : > { %2514 = vmatpush3.bf16.msk.msra.mxu0 %vm2963_vm1, %v2797_v21 }
  0x2d   : > { %2516 = vmatprep.subr.msk.bf16.mxu0 %vm2975_vm6, %v2797_v21 }
  0x30   : > { %2518 = vmatpush3.bf16.msk.msra.mxu0 %vm2975_vm6, %v2797_v21 }
  0x31   : > { %2520 = vmatprep.subr.msk.bf16.mxu0 %vm2987_vm10, %v2797_v21 }
  0x34   : > { %2522 = vmatpush3.bf16.msk.msra.mxu0 %vm2987_vm10, %v2797_v21 }
  0x35   : > { %2524 = vmatprep.subr.bf16.mxu0 %v2523_v48 }
  0x37   : > { %2298 = vmatmul.mubr.f32.vlgmr.msra.gmra.mrb[0].mxu0 %v1979_v26 }
  0x38   : > { %2526 = vmatpush3.bf16.msra.mxu0 %v2523_v48  ;;  %2304 = vmatprep.mubr.msk.f32.mxu0 %vm457_vm12, %v3005_v49 }
  0x3b   : > { %2305 = vmatmul.mubr.msk.f32.vlgmr.msra.gmra.mrb[2].mxu0 %vm457_vm12, %v3012_v50 }
  0x3c   : > { %2307 = vmatprep.mubr.msk.f32.mxu0 %vm457_vm12, %v3017_v51 }
  0x3f   : > { %2308 = vmatmul.mubr.msk.f32.gmra.mrb[4].mxu0 %vm457_vm12, %v3026_v52 }
  0x40   : > { %2310 = vmatprep.mubr.msk.f32.mxu0 %vm457_vm12, %v3031_v53 }
  0x43   : > { %2311 = vmatmul.mubr.msk.f32.gmra.mrb[6].mxu0 %vm457_vm12, %v3040_v54 }
  0x44   : > { %2313 = vmatprep.mubr.msk.f32.mxu0 %vm457_vm12, %v3047_v55 }
  0x47   : > { %2314 = vmatmul.mubr.msk.f32.gmra.mrb[8].mxu0 %vm457_vm12, %v3054_v56 }
  0x48   : > { %2320 = vmatprep.mubr.msk.f32.mxu0 %vm457_vm12, %v3061_v57 }
  0x90   : > { %v3234_v22 = vpop.permute.xlu0 %889  ;;  %v3236_v36 = vpop.permute.xlu1 %899 }
  0x94   : > { %v3238_v41 = vpop.permute.xlu0 %894  ;;  %v3240_v44 = vpop.permute.xlu1 %869 }
  0x9a   : > { %v3242_v47 = vpop.permute.xlu0 %874 }
 0x10a   : > { %v2299_v12 = vpop.f32.mrb[0].mxu0 }
 0x10b   : > { %v431_v13 = vpop.f32.mrb[1].mxu0 }
 0x10c   : > { %v2527_v14 = vpack.c.bf16 %v2299_v12, %v431_v13 }
 0x10e   : > { %2528 = vmatprep.subr.bf16.mxu0 %v2527_v14  ;;  %2583 = vmatprep.subr.bf16.mxu1 %v2527_v14 }
 0x10f   : > { %2530 = vmatpush3.bf16.msra.mxu0 %v2527_v14  ;;  %2584 = vmatpush3.bf16.msra.mxu1 %v2527_v14 }
 0x110   : > { %2536 = vmatprep.subr.bf16.mxu0 %v2535_v15  ;;  %2532 = vmatprep.subr.bf16.mxu1 %v2531_v16 }
 0x112   : > { %2321 = vmatmul.mubr.msk.f32.vlgmr.msra.gmra.mrb[2].mxu0 %vm457_vm12, %v441_v18  ;;  %2324 = vmatmul.mubr.msk.f32.vlgmr.msra.gmra.mrb[0].mxu1 %vm457_vm12, %v443_v19  ;;  %v3123_v23 = vpop.f32.mrb[4].mxu0 }
 0x113   : > { %2538 = vmatpush3.bf16.msra.mxu0 %v2535_v15  ;;  %2326 = vmatprep.mubr.msk.f32.mxu1 %vm457_vm12, %v444_v20  ;;  %v3129_v26 = vpop.f32.mrb[5].mxu0 }
 0x114   : > { %2352 = vmatprep.mubr.msk.f32.mxu0 %vm457_vm12, %v3005_v49  ;;  %2534 = vmatpush3.bf16.msra.mxu1 %v2531_v16  ;;  %v3244_v49 = vpop.permute.xlu1 %879 }
 0x115   : > { %2540 = vmatprep.subr.bf16.mxu0 %v2531_v16  ;;  %2547 = vmatprep.subr.bf16.mxu1 %v2799_v46 }
 0x116   : > { %2327 = vmatmul.mubr.msk.f32.gmra.mrb[2].mxu1 %vm457_vm12, %v445_v25  ;;  %2353 = vmatmul.mubr.msk.f32.vlgmr.msra.gmra.mrb[10].mxu0 %vm457_vm12, %v3012_v50 }
 0x117   : > { %2329 = vmatprep.mubr.msk.f32.mxu1 %vm457_vm12, %v446_v27  ;;  %2355 = vmatprep.mubr.msk.f32.mxu0 %vm457_vm12, %v3017_v51  ;;  %v3246_v51 = vpop.permute.xlu0 %1810 }
 0x118   : > { %2542 = vmatpush3.bf16.msra.mxu0 %v2531_v16 }
 0x119   : > { %2544 = vmatprep.subr.bf16.mxu0 %v2931_v30 }
 0x11a   : > { %2330 = vmatmul.mubr.msk.f32.gmra.mrb[4].mxu1 %vm457_vm12, %v447_v28  ;;  %2356 = vmatmul.mubr.msk.f32.gmra.mrb[12].mxu0 %vm457_vm12, %v3026_v52 }
 0x11b   : > { %2336 = vmatprep.mubr.msk.f32.mxu1 %vm457_vm12, %v2020_v29  ;;  %2358 = vmatprep.mubr.msk.f32.mxu0 %vm457_vm12, %v3031_v53  ;;  %v885_v60 = vpop.permute.xlu0 %884 }
 0x11e   : > { %2337 = vmatmul.mubr.msk.f32.vlgmr.msra.gmra.mrb[6].mxu1 %vm457_vm12, %v2021_v32  ;;  %2359 = vmatmul.mubr.msk.f32.gmra.mrb[14].mxu0 %vm457_vm12, %v3040_v54 }
 0x11f   : > { %2339 = vmatprep.mubr.msk.f32.mxu1 %vm457_vm12, %v2022_v33  ;;  %2361 = vmatprep.mubr.msk.f32.mxu0 %vm457_vm12, %v3047_v55 }
 0x120   : > { %2549 = vmatpush3.bf16.msk.msra.mxu1 %vm2905_vm4, %v2797_v21  ;;  %vm2800_vm4 = vmmov 0  }
 0x121   : > { %2550 = vmatprep.subr.bf16.mxu1 %v2799_v46 }
 0x122   : > { %2340 = vmatmul.mubr.msk.f32.gmra.mrb[0].mxu1 %vm457_vm12, %v2023_v34  ;;  %2362 = vmatmul.mubr.msk.f32.gmra.mrb[16].mxu0 %vm457_vm12, %v3054_v56  ;;  %v3250_v56 = vpop.permute.xlu1 %1815 }
 0x123   : > { %2342 = vmatprep.mubr.msk.f32.mxu1 %vm457_vm12, %v2024_v35  ;;  %2368 = vmatprep.mubr.msk.f32.mxu0 %vm457_vm12, %v3061_v57 }
 0x124   : > { %2552 = vmatpush3.bf16.msk.msra.mxu1 %vm2912_vm5, %v2797_v21  ;;  %vm1409_vm5 = vcmask 195584  }
 0x125   : > { %2553 = vmatprep.subr.bf16.mxu1 %v2799_v46 }
 0x126   : > { %2343 = vmatmul.mubr.msk.f32.gmra.mrb[2].mxu1 %vm457_vm12, %v2025_v37  ;;  %2369 = vmatmul.mubr.msk.f32.vlgmr.msra.gmra.mrb[10].mxu0 %vm457_vm12, %v441_v18  ;;  %v3253_v4 = vpop.permute.xlu1 %1800 }
 0x127   : > { %2345 = vmatprep.mubr.msk.f32.mxu1 %vm457_vm12, %v2026_v38  ;;  %2371 = vmatprep.mubr.msk.f32.mxu0 %vm457_vm12, %v3066_v58 }
 0x128   : > { %2546 = vmatpush3.bf16.msra.mxu0 %v2931_v30  ;;  %v2312_v30 = vpop.f32.mrb[6].mxu0  ;;  %2555 = vmatpush3.bf16.msk.msra.mxu1 %vm2924_vm8, %v2797_v21 }
 0x129   : > { %v568_v40 = vpop.f32.mrb[7].mxu0  ;;  %2556 = vmatprep.subr.bf16.mxu1 %v2799_v46 }
 0x12a   : > { %2346 = vmatmul.mubr.msk.f32.gmra.mrb[4].mxu1 %vm457_vm12, %v2027_v39  ;;  %2372 = vmatmul.mubr.msk.f32.gmra.mrb[12].mxu0 %vm457_vm12, %v443_v19  ;;  %v2315_v42 = vpop.f32.mrb[8].mxu0  ;;  %v865_v11 = vpop.permute.xlu1 %864 }
 0x12b   : > { %2374 = vmatprep.mubr.msk.f32.mxu0 %vm457_vm12, %v444_v20  ;;  %v578_v43 = vpop.f32.mrb[9].mxu0  ;;  %2428 = vmatprep.mubr.msk.f32.mxu1 %vm2800_vm4, %v2801_v17 }
 0x12c   : > { %2558 = vmatpush3.bf16.msk.msra.mxu1 %vm2939_vm11, %v2797_v21 }
 0x12d   : > { %2559 = vmatprep.subr.bf16.mxu1 %v2799_v46 }
 0x12e   : > { %2375 = vmatmul.mubr.msk.f32.gmra.mrb[14].mxu0 %vm457_vm12, %v445_v25 }
 0x12f   : > { %2377 = vmatprep.mubr.msk.f32.mxu0 %vm457_vm12, %v446_v27 }
 0x130   : > { %2561 = vmatpush3.bf16.msk.msra.mxu1 %vm2951_vm14, %v2797_v21 }
 0x131   : > { %2562 = vmatprep.subr.bf16.mxu1 %v2799_v46 }
 0x132   : > { %2378 = vmatmul.mubr.msk.f32.gmra.mrb[16].mxu0 %vm457_vm12, %v447_v28 }
 0x133   : > { %2384 = vmatprep.mubr.msk.f32.mxu0 %vm457_vm12, %v2020_v29 }
 0x134   : > { %2564 = vmatpush3.bf16.msk.msra.mxu1 %vm2963_vm1, %v2797_v21 }
 0x135   : > { %2565 = vmatprep.subr.bf16.mxu1 %v2799_v46 }
 0x136   : > { %2385 = vmatmul.mubr.msk.f32.vlgmr.msra.gmra.mrb[10].mxu0 %vm457_vm12, %v2021_v32 }
 0x137   : > { %2387 = vmatprep.mubr.msk.f32.mxu0 %vm457_vm12, %v2022_v33 }
 0x138   : > { %2567 = vmatpush3.bf16.msk.msra.mxu1 %vm2975_vm6, %v2797_v21 }
 0x139   : > { %2568 = vmatprep.subr.bf16.mxu1 %v2799_v46 }
 0x13a   : > { %2388 = vmatmul.mubr.msk.f32.gmra.mrb[12].mxu0 %vm457_vm12, %v2023_v34 }
 0x13b   : > { %2390 = vmatprep.mubr.msk.f32.mxu0 %vm457_vm12, %v2024_v35 }
 0x13c   : > { %2570 = vmatpush3.bf16.msk.msra.mxu1 %vm2987_vm10, %v2797_v21 }
 0x13e   : > { %2391 = vmatmul.mubr.msk.f32.gmra.mrb[14].mxu0 %vm457_vm12, %v2025_v37 }
 0x13f   : > { %2393 = vmatprep.mubr.msk.f32.mxu0 %vm457_vm12, %v2026_v38 }
 0x142   : > { %2394 = vmatmul.mubr.msk.f32.gmra.mrb[16].mxu0 %vm457_vm12, %v2027_v39 }
 0x1e5   : > { %v2322_v24 = vpop.f32.mrb[2].mxu0 }
 0x1e6   : > { %v677_v31 = vpop.f32.mrb[3].mxu0 }
 0x1f1   : > { %v2338_v48 = vpop.f32.mrb[6].mxu1 }
 0x1f2   : > { %v2585_v45 = vadd.f32 %v2338_v48, %v2322_v24  ;;  %v815_v21 = vpop.f32.mrb[7].mxu1 }
 0x1f3   : > { %v2586_v50 = vadd.f32 %v815_v21, %v677_v31 }
 0x1f4   : > { %v903_v12 = vadd.f32 %v2585_v45, %v3240_v44 }
 0x1f5   : > { %v2341_v52 = vpop.f32.mrb[0].mxu1  ;;  %v902_v13 = vadd.f32 %v2586_v50, %v865_v11 }
 0x1f6   : > { %v2587_v53 = vadd.f32 %v2341_v52, %v3123_v23  ;;  %v825_v54 = vpop.f32.mrb[1].mxu1 }
 0x1f7   : > { %v2588_v55 = vadd.f32 %v825_v54, %v3129_v26 }
 0x1f8   : > { %v905_v19 = vadd.f32 %v2587_v53, %v3244_v49 }
 0x1f9   : > { %v2344_v57 = vpop.f32.mrb[2].mxu1  ;;  %v904_v23 = vadd.f32 %v2588_v55, %v3242_v47 }
 0x1fa   : > { %v2589_v58 = vadd.f32 %v2344_v57, %v2312_v30  ;;  %v835_v59 = vpop.f32.mrb[3].mxu1 }
 0x1fb   : > { %v2590_v61 = vadd.f32 %v835_v59, %v568_v40 }
 0x1fc   : > { %v907_v62 = vadd.f32 %v2589_v58, %v3234_v22 }
 0x1fd   : > { %v906_v63 = vadd.f32 %v2590_v61, %v885_v60  ;;  %v2347_v0 = vpop.f32.mrb[4].mxu1 }
 0x1fe   : > { %v2061_v1 = vmul.f32 -1.442695, %v907_v62  ;;  %v2591_v2 = vadd.f32 %v2347_v0, %v2315_v42  ;;  %v845_v3 = vpop.f32.mrb[5].mxu1 }
 0x1ff   : > { %v2060_v5 = vmul.f32 -1.442695, %v906_v63  ;;  %v2592_v6 = vadd.f32 %v845_v3, %v578_v43 }
 0x200   : > { %2673 = vpow2.f32 %v2061_v1  ;;  %v909_v7 = vadd.f32 %v2591_v2, %v3236_v36 }
 0x201   : > { %2675 = vpow2.f32 %v2060_v5  ;;  %v908_v8 = vadd.f32 %v2592_v6, %v3238_v41 }
 0x202   : > { %v2063_v9 = vmul.f32 -1.442695, %v909_v7 }
 0x203   : > { %v2062_v10 = vmul.f32 -1.442695, %v908_v8 }
 0x204   : > { %2677 = vpow2.f32 %v2063_v9 }
 0x205   : > { %2679 = vpow2.f32 %v2062_v10 }
 0x206   : > { %2681 = vtanh.f32 %v903_v12 }
 0x207   : > { %2683 = vtanh.f32 %v902_v13 }
 0x209   : > { %v2386_v14 = vpop.f32.mrb[10].mxu0 }
 0x20a   : > { %v2674_v15 = vpop.eup %2673  ;;  %v1186_v16 = vpop.f32.mrb[11].mxu0 }
 0x20b   : > { %v2676_v18 = vpop.eup %2675  ;;  %v1258_v20 = vadd.f32 1.0, %v2674_v15  ;;  %v1233_v59 = vadd.f32 %v1186_v16, %v865_v11 }
 0x20c   : > { %v1257_v25 = vadd.f32 1.0, %v2676_v18 }
 0x20d   : > { %2685 = vrcp.f32 %v1258_v20  ;;  %v2389_v26 = vpop.f32.mrb[12].mxu0  ;;  %v2086_v20 = vld [vmem:[%s3430_s3 + $0x48] sm:$0xff] }
 0x20e   : > { %v2678_v27 = vpop.eup %2677  ;;  %2687 = vrcp.f32 %v1257_v25  ;;  %v1196_v28 = vpop.f32.mrb[13].mxu0  ;;  %v1236_v63 = vadd.f32 %v2389_v26, %v3244_v49  ;;  %v2089_v25 = vld [vmem:[%s3430_s3 + $0x60] sm:$0xff]  ;;  %v2090_v26 = vld [vmem:[%s3430_s3 + $0x68] sm:$0xff] }
 0x20f   : > { %v2680_v29 = vpop.eup %2679  ;;  %2689 = vtanh.f32 %v905_v19  ;;  %v1260_v32 = vadd.f32 1.0, %v2678_v27  ;;  %v1235_v1 = vadd.f32 %v1196_v28, %v3242_v47  ;;  %v2085_v19 = vld [vmem:[%s3430_s3 + $0x40] sm:$0xff]  ;;  %v2091_v27 = vld [vmem:[%s3430_s3 + $0x70] sm:$0xff]  ;;  %v2092_v28 = vld [vmem:[%s3430_s3 + $0x78] sm:$0xff] }
 0x210   : > { %2691 = vtanh.f32 %v904_v23  ;;  %v1259_v33 = vadd.f32 1.0, %v2680_v29  ;;  %v2682_v30 = vpop.eup %2681  ;;  %v2087_v23 = vld [vmem:[%s3430_s3 + $0x50] sm:$0xff]  ;;  %v1392_v29 = vld [vmem:[%s3430_s3] sm:$0xff] }
 0x211   : > { %2693 = vrcp.f32 %v1260_v32  ;;  %v2392_v34 = vpop.f32.mrb[14].mxu0  ;;  %v2684_v43 = vpop.eup %2683 }
 0x212   : > { %2695 = vrcp.f32 %v1259_v33  ;;  %v1238_v35 = vadd.f32 %v2392_v34, %v3234_v22  ;;  %v1206_v37 = vpop.f32.mrb[15].mxu0 }
 0x213   : > { %v1237_v38 = vadd.f32 %v1206_v37, %v885_v60 }
 0x214   : > { %v2065_v39 = vmul.f32 -1.442695, %v1238_v35 }
 0x215   : > { %v2064_v40 = vmul.f32 -1.442695, %v1237_v38  ;;  %v2395_v42 = vpop.f32.mrb[16].mxu0 }
 0x216   : > { %2697 = vpow2.f32 %v2065_v39  ;;  %v1240_v46 = vadd.f32 %v2395_v42, %v3236_v36  ;;  %v1216_v24 = vpop.f32.mrb[17].mxu0  ;;  %v1395_v42 = vld [vmem:[%s3430_s3 + $0x18] sm:$0xff] }
 0x217   : > { %v2686_v31 = vpop.eup %2685  ;;  %2699 = vpow2.f32 %v2064_v40  ;;  %v1239_v48 = vadd.f32 %v1216_v24, %v3238_v41  ;;  %v1234_v41 = vadd.f32 %v2386_v14, %v3240_v44  ;;  %v1394_v40 = vld [vmem:[%s3430_s3 + $0x10] sm:$0xff] }
 0x218   : > { %v2688_v45 = vpop.eup %2687  ;;  %v2067_v22 = vmul.f32 -1.442695, %v1240_v46  ;;  %v1270_v21 = vmul.f32 %v2686_v31, %v2682_v30  ;;  %v1393_v30 = vld [vmem:[%s3430_s3 + $0x8] sm:$0xff]  ;;  %v1398_v24 = vld [vmem:[%s3430_s3 + $0x30] sm:$0xff]  ;;  %v1399_v31 = vld [vmem:[%s3430_s3 + $0x38] sm:$0xff] }
 0x219   : > { %v2690_v50 = vpop.eup %2689  ;;  %v1269_v52 = vmul.f32 %v2688_v45, %v2684_v43  ;;  %v2066_v53 = vmul.f32 -1.442695, %v1239_v48  ;;  %v1396_v43 = vld [vmem:[%s3430_s3 + $0x20] sm:$0xff]  ;;  %v1397_v46 = vld [vmem:[%s3430_s3 + $0x28] sm:$0xff] }
 0x21a   : > { %v2692_v54 = vpop.eup %2691  ;;  %2701 = vpow2.f32 %v2067_v22  ;;  %v2109_v48 = vld [vmem:[%s3430_s3 + $0x80] sm:$0xff]  ;;  %v2110_v45 = vld [vmem:[%s3430_s3 + $0x88] sm:$0xff]  ;;  %v2111_v22 = vld [vmem:[%s3430_s3 + $0x90] sm:$0xff] }
 0x21b   : > { %v2694_v36 = vpop.eup %2693  ;;  %1305 = vst [vmem:[%s3267_s28] sm:$0xff] %v1269_v52  ;;  %2703 = vpow2.f32 %v2066_v53  ;;  %v2114_v52 = vld [vmem:[%s3430_s3 + $0xa8] sm:$0xff]  ;;  %v2115_v53 = vld [vmem:[%s3430_s3 + $0xb0] sm:$0xff] }
 0x21c   : > { %v2696_v55 = vpop.eup %2695  ;;  %v1272_v57 = vmul.f32 %v2694_v36, %v2690_v50  ;;  %2705 = vtanh.f32 %v1234_v41  ;;  %v2113_v50 = vld [vmem:[%s3430_s3 + $0xa0] sm:$0xff] }
 0x21d   : > { %v1271_v58 = vmul.f32 %v2696_v55, %v2692_v54  ;;  %2707 = vtanh.f32 %v1233_v59  ;;  %v2116_v54 = vld [vmem:[%s3430_s3 + $0xb8] sm:$0xff] }
 0x21f   : > { %v2571_v60 = vpack.c.bf16 %v1271_v58, %v1270_v21  ;;  %v2112_v21 = vld [vmem:[%s3430_s3 + $0x98] sm:$0xff] }
 0x220   : > { %v2698_v61 = vpop.eup %2697 }
 0x221   : > { %v2700_v62 = vpop.eup %2699  ;;  %v1290_v0 = vadd.f32 1.0, %v2698_v61  ;;  %2572 = vmatprep.subr.bf16.mxu1 %v2571_v60 }
 0x222   : > { %v1289_v2 = vadd.f32 1.0, %v2700_v62 }
 0x223   : > { %2709 = vrcp.f32 %v1290_v0 }
 0x224   : > { %v2702_v3 = vpop.eup %2701  ;;  %2711 = vrcp.f32 %v1289_v2 }
 0x225   : > { %v2704_v5 = vpop.eup %2703  ;;  %2713 = vtanh.f32 %v1236_v63  ;;  %v1292_v44 = vadd.f32 1.0, %v2702_v3 }
 0x226   : > { %2715 = vtanh.f32 %v1235_v1  ;;  %v1291_v6 = vadd.f32 1.0, %v2704_v5  ;;  %v2706_v7 = vpop.eup %2705 }
 0x227   : > { %2717 = vrcp.f32 %v1292_v44  ;;  %v2708_v8 = vpop.eup %2707 }
 0x228   : > { %2719 = vrcp.f32 %v1291_v6 }
 0x22d   : > { %v2710_v49 = vpop.eup %2709 }
 0x22e   : > { %v2712_v9 = vpop.eup %2711  ;;  %v1302_v10 = vmul.f32 %v2710_v49, %v2706_v7 }
 0x22f   : > { %v2714_v11 = vpop.eup %2713  ;;  %v1301_v12 = vmul.f32 %v2712_v9, %v2708_v8  ;;  %v1806_v9 = vpop.permute.xlu0 %1805 }
 0x230   : > { %v2716_v47 = vpop.eup %2715  ;;  %2429 = vmatmul.mubr.f32.vlgmr.msra.gmra.mrb[8].mxu1 %v1302_v10 }
 0x231   : > { %v2718_v13 = vpop.eup %2717  ;;  %2068 = vst [vmem:[%s3267_s28 + $0x8] sm:$0xff] %v1301_v12  ;;  %2574 = vmatpush3.bf16.msra.mxu1 %v2571_v60  ;;  %2431 = vmatprep.mubr.msk.f32.mxu1 %vm2800_vm4, %v2801_v17  ;;  %s2739_s28 = scalar_lea.vmem %s2738_s26, 512 }
 0x232   : > { %v2720_v14 = vpop.eup %2719  ;;  %2441 = vmatprep.subr.mxu1 %v1272_v57  ;;  %v1304_v15 = vmul.f32 %v2718_v13, %v2714_v11  ;;  %p2741_p1 = scmp.lt.s32.totalorder %s2739_s28, %s2733_s19 }
 0x233   : > { %v1303_v16 = vmul.f32 %v2720_v14, %v2716_v47 }
 0x234   : > { %p2742_p2 = por %p2741_p1, %p2740_p0 }
 0x235   : > { %2442 = vmatpush3.msra.mxu1 %v1272_v57  ;;  %v2579_v18 = vpack.c.bf16 %v1303_v16, %v1302_v10 }
 0x236   : > { %2432 = vmatmul.mubr.f32.gmra.mrb[10].mxu1 %v1303_v16  ;;  %p2743_p3 = pnand %p2742_p2, %p2736_p13 }
 0x237   : > { %2434 = vmatprep.mubr.msk.f32.mxu1 %vm2800_vm4, %v2801_v17  ;;  %v2088_v17 = vld [vmem:[%s3430_s3 + $0x58] sm:$0xff] }
 0x23a   : > { %2435 = vmatmul.mubr.f32.gmra.mrb[12].mxu1 %v1304_v15 }
 0x23b   : > { %2443 = vmatprep.mubr.msk.f32.mxu1 %vm1409_vm5, %v2085_v19 }
 0x23e   : > { %2444 = vmatmul.mubr.msk.f32.vlgmr.msra.gmra.mrb[14].mxu1 %vm1409_vm5, %v2086_v20 }
 0x23f   : > { %2446 = vmatprep.mubr.msk.f32.mxu1 %vm1409_vm5, %v2087_v23 }
 0x242   : > { %2447 = vmatmul.mubr.msk.f32.gmra.mrb[16].mxu1 %vm1409_vm5, %v2088_v17 }
 0x243   : > { %2449 = vmatprep.mubr.msk.f32.mxu1 %vm1409_vm5, %v2089_v25 }
 0x246   : > { %2450 = vmatmul.mubr.msk.f32.gmra.mrb[18].mxu1 %vm1409_vm5, %v2090_v26 }
 0x247   : > { %2452 = vmatprep.mubr.msk.f32.mxu1 %vm1409_vm5, %v2091_v27 }
 0x24a   : > { %2453 = vmatmul.mubr.msk.f32.gmra.mrb[20].mxu1 %vm1409_vm5, %v2092_v28 }
 0x24b   : > { %2461 = vmatprep.mubr.msk.f32.mxu1 %vm1409_vm5, %v1392_v29 }
 0x303   : > { %v1374_v32 = vpop.f32.mrb[8].mxu1 }
 0x304   : > { %v2430_v33 = vpop.f32.mrb[9].mxu1 }
 0x309   : > { %v1379_v34 = vpop.f32.mrb[10].mxu1 }
 0x30a   : > { %v2575_v35 = vpack.c.bf16 %v1379_v34, %v1374_v32  ;;  %v2433_v37 = vpop.f32.mrb[11].mxu1 }
 0x30c   : > { %2576 = vmatprep.subr.bf16.mxu1 %v2575_v35 }
 0x30d   : > { %v1384_v38 = vpop.f32.mrb[12].mxu1  ;;  %2578 = vmatpush3.bf16.msra.mxu1 %v2575_v35 }
 0x30e   : > { %v2436_v39 = vpop.f32.mrb[13].mxu1  ;;  %2459 = vmatprep.subr.mxu1 %v1384_v38 }
 0x311   : > { %2460 = vmatpush3.msra.mxu1 %v1384_v38 }
 0x312   : > { %2462 = vmatmul.mubr.msk.f32.vlgmr.msra.gmra.mrb[14].mxu1 %vm1409_vm5, %v1393_v30  ;;  %2580 = vmatprep.subr.bf16.mxu1 %v2579_v18 }
 0x313   : > { %2582 = vmatpush3.bf16.msra.mxu1 %v2579_v18  ;;  %2464 = vmatprep.mubr.msk.f32.mxu1 %vm1409_vm5, %v1394_v40 }
 0x314   : > { %2477 = vmatprep.subr.mxu1 %v1304_v15 }
 0x315   : > { %v2448_v36 = vpop.f32.mrb[16].mxu1 }
 0x316   : > { %2465 = vmatmul.mubr.msk.f32.gmra.mrb[22].mxu1 %vm1409_vm5, %v1395_v42  ;;  %v1510_v55 = vpop.f32.mrb[17].mxu1 }
 0x317   : > { %2478 = vmatpush3.msra.mxu1 %v1304_v15  ;;  %2467 = vmatprep.mubr.msk.f32.mxu1 %vm1409_vm5, %v1396_v43 }
 0x31a   : > { %2468 = vmatmul.mubr.msk.f32.gmra.mrb[18].mxu1 %vm1409_vm5, %v1397_v46 }
 0x31b   : > { %2470 = vmatprep.mubr.msk.f32.mxu1 %vm1409_vm5, %v1398_v24 }
 0x31d   : > { %v2454_v57 = vpop.f32.mrb[20].mxu1 }
 0x31e   : > { %2471 = vmatmul.mubr.msk.f32.gmra.mrb[24].mxu1 %vm1409_vm5, %v1399_v31  ;;  %v1528_v41 = vpop.f32.mrb[21].mxu1 }
 0x31f   : > { %2479 = vmatprep.mubr.msk.f32.mxu1 %vm1409_vm5, %v2109_v48 }
 0x322   : > { %2480 = vmatmul.mubr.msk.f32.vlgmr.msra.gmra.mrb[14].mxu1 %vm1409_vm5, %v2110_v45 }
 0x323   : > { %2482 = vmatprep.mubr.msk.f32.mxu1 %vm1409_vm5, %v2111_v22 }
 0x326   : > { %2483 = vmatmul.mubr.msk.f32.gmra.mrb[26].mxu1 %vm1409_vm5, %v2112_v21 }
 0x327   : > { %2485 = vmatprep.mubr.msk.f32.mxu1 %vm1409_vm5, %v2113_v50 }
 0x32a   : > { %2486 = vmatmul.mubr.msk.f32.gmra.mrb[18].mxu1 %vm1409_vm5, %v2114_v52 }
 0x32b   : > { %2488 = vmatprep.mubr.msk.f32.mxu1 %vm1409_vm5, %v2115_v53 }
 0x32e   : > { %2489 = vmatmul.mubr.msk.f32.gmra.mrb[28].mxu1 %vm1409_vm5, %v2116_v54 }
 0x3e9   : > { %v2466_v58 = vpop.f32.mrb[22].mxu1 }
 0x3ea   : > { %v1635_v59 = vpop.f32.mrb[23].mxu1 }
 0x3f1   : > { %v2472_v60 = vpop.f32.mrb[24].mxu1 }
 0x3f2   : > { %v1653_v61 = vpop.f32.mrb[25].mxu1 }
 0x3f5   : > { %v2481_v62 = vpop.f32.mrb[14].mxu1 }
 0x3f6   : > { %v1759_v63 = vpop.f32.mrb[15].mxu1  ;;  %v1819_v10 = vadd.f32 %v2481_v62, %v1806_v9 }
 0x3f7   : > { %v1818_v11 = vadd.f32 %v3253_v4, %v1759_v63 }
 0x3f9   : > { %v2484_v0 = vpop.f32.mrb[26].mxu1 }
 0x3fa   : > { %v1769_v1 = vpop.f32.mrb[27].mxu1 }
 0x3fd   : > { %v2487_v2 = vpop.f32.mrb[18].mxu1 }
 0x3fe   : > { %v1821_v3 = vadd.f32 %v2487_v2, %v3250_v56  ;;  %v1777_v5 = vpop.f32.mrb[19].mxu1 }
 0x3ff   : > { %v1820_v44 = vadd.f32 %v3246_v51, %v1777_v5 }
 0x400   : > { %v2126_v6 = vmul.f32 -1.442695, %v1821_v3 }
 0x401   : > { %v2125_v7 = vmul.f32 -1.442695, %v1820_v44  ;;  %v2490_v8 = vpop.f32.mrb[28].mxu1 }
 0x402   : > { %2721 = vpow2.f32 %v2126_v6  ;;  %v1787_v49 = vpop.f32.mrb[29].mxu1 }
 0x403   : > { %2723 = vpow2.f32 %v2125_v7 }
 0x404   : > { %2725 = vtanh.f32 %v1819_v10 }
 0x405   : > { %2727 = vtanh.f32 %v1818_v11 }
 0x40c   : > { %v2722_v12 = vpop.eup %2721 }
 0x40d   : > { %v2724_v47 = vpop.eup %2723  ;;  %v1831_v13 = vadd.f32 1.0, %v2722_v12 }
 0x40e   : > { %v1830_v56 = vadd.f32 1.0, %v2724_v47  ;;  %v2726_v51 = vpop.eup %2725 }
 0x40f   : > { %2729 = vrcp.f32 %v1831_v13  ;;  %v2728_v14 = vpop.eup %2727 }
 0x410   : > { %2731 = vrcp.f32 %v1830_v56 }
 0x419   : > { %v2730_v15 = vpop.eup %2729 }
 0x41a   : > { %v2732_v16 = vpop.eup %2731  ;;  %v1837_v18 = vmul.f32 %v2730_v15, %v2726_v51 }
 0x41b   : > { %v1836_v4 = vmul.f32 %v2732_v16, %v2728_v14 }
 0x41c   : > { %1839 = vst [vmem:[%s252_s14 + $0x8] sm:$0xff] %v1837_v18 }
 0x41d   : > { %1838 = vst [vmem:[%s252_s14] sm:$0xff] %v1836_v4 }
 0x41e   : > { %2746 = shalt.err (!%p2743_p3)
}
 0x41f   : > { %s2747_s9 = scalar_lea.hbm %s3382_s18, 256  ;;  %s2751_s10 = scalar_lea.hbm %s3433_s6, 1024 }
 0x420   : > { %p2748_p4 = scmp.ne.s32.totalorder %s3382_s18, %s2747_s9  ;;  %p2752_p9 = scmp.lt.u32.totalorder %s3382_s18, %s3433_s6 }
 0x421   : > { %p2753_p10 = scmp.lt.u32.totalorder %s2751_s10, %s2747_s9  ;;  %p2755_p12 = scmp.lt.u32.totalorder %s2747_s9, %s3382_s18 }
 0x422   : > { %p2749_p7 = pnand %p2748_p4, %p2878_p5 }
 0x423   : > { %p2754_p11 = por %p2753_p10, %p2752_p9 }
 0x424   : > { %p2750_p8 = pneg %p2749_p7 }
 0x425   : > { %p2756_p13 = por %p2755_p12, %p2754_p11 }
 0x427   : > { %p2757_p0 = pnand %p2756_p13, %p2750_p8 }
 0x429   : > { %2760 = shalt.err (!%p2757_p0)
}
 0x42a   : > { %s2803_s14 = smov 128   ;;  %s2804_s16 = smov 8  }
 0x42b   : > { %2625 = dma.vmem_to_hbm [thread:$0]  (%p2878_p5), %s3384_s15, 256, %s3382_s18, %s3386_s25, %s2803_s14, %s2803_s14, %s2804_s16  }
 0x42c PF: > { %p2631_p1 = scmp.ge.s32.totalorder %s2795_s24, 2  ;;  %s1885_s17 = sand.u32 1, %s2783_s21  }
 0x42d   : > { %s1886_s19 = scalar_lea.sflag [#allocation3], %s1885_s17 }
 0x42e   : > { %p2628_p2 = pnand %p2631_p1, %p2882_p6 }
 0x430   : > { %2778 = dma.done.wait (!%p2628_p2), %s1886_s19, 256  }
 0x431   : > { %2780 = vsyncadd (!%p2628_p2), %s1886_s19, 4294967040  ;;  %p17_p3 = scmp.ge.s32.totalorder %s2865_s27, 6   ;;  %s3452_s21 = smov %s2787_s22 }
 0x432   : > { %s3453_s22 = smov %s2791_s23  ;;  %s3454_s23 = smov %s2876_s30 }
 0x433   : > { %s3455_s24 = smov %s2865_s27  ;;  %19 = sbr.rel (!%p17_p3) target bundleno = 3 (0x3), region = 95 }
 0x43a   :  { %1891 = vsyncpa [#allocation3], 1 }
 0x43b   :  { %1893 = vsyncpa [#allocation3 + $0x1], 1 }

</bundles_post_ra>
